<compile_context>
chip_gen: v7x
topology: tpu7x:2x2x1
jax: 0.10.0
libtpu: 0.0.40
codegen_flags: <defaults>
</compile_context>

<pallas_src>
import functools

import jax
import jax.numpy as jnp
from jax.experimental import pallas as pl
from jax.experimental.pallas import tpu as pltpu


def _classifier_kernel(x_ref, w_ref, s_ref, o_ref, *, normalize: bool, packed: bool,
                       d: int, eps: float):
    # x_ref : (TM, W) input rows (W = k*D when packed, else D)
    # w_ref : packed  -> (W, 2k) = [SEG | blockdiag(w_eff)]   (LN)
    #                   (W, k)  = blockdiag(w_eff)            (linear only)
    #         unpacked-> (1, W) folded weight row
    # s_ref : (2,) SMEM scalars [b_eff, sum(w_eff)]
    # o_ref : (TM, k) packed / (TM, 1) unpacked
    x = x_ref[...].astype(jnp.float32)
    b = s_ref[0]

    if packed:
        k = o_ref.shape[-1]
        a = w_ref[...]
        if normalize:
            w_sum = s_ref[1]
            # One dot gives both the segment sums S1 (SEG columns) and Sw (block-diag w cols).
            r = jnp.dot(x, a, precision=jax.lax.Precision.HIGHEST,
                        preferred_element_type=jnp.float32)            # (TM, 2k)
            s1 = r[:, :k]
            sw = r[:, k:]
            sq = x * x                                                  # only VPU multiply
            s2 = jnp.dot(sq, a[:, :k], precision=jax.lax.Precision.HIGHEST,
                         preferred_element_type=jnp.float32)            # (TM, k)
            inv_d = 1.0 / d
            mean = s1 * inv_d
            var = s2 * inv_d - mean * mean
            out = (sw - mean * w_sum) * jax.lax.rsqrt(var + eps) + b
        else:
            out = jnp.dot(x, a, precision=jax.lax.Precision.HIGHEST,
                          preferred_element_type=jnp.float32) + b       # (TM, k)
    else:
        w = w_ref[...]                                                   # (1, W) f32
        if normalize:
            w_sum = s_ref[1]
            # Single-pass moments: no centered copy, no second pass over the tile.
            s1 = jnp.sum(x, axis=-1, keepdims=True)
            s2 = jnp.sum(x * x, axis=-1, keepdims=True)
            sw = jnp.sum(x * w, axis=-1, keepdims=True)
            inv_d = 1.0 / d
            mean = s1 * inv_d
            var = s2 * inv_d - mean * mean
            out = (sw - mean * w_sum) * jax.lax.rsqrt(var + eps) + b
        else:
            out = jnp.sum(x * w, axis=-1, keepdims=True) + b

    o_ref[...] = out.astype(o_ref.dtype)


def binary_classifier_forward(x, gamma, beta, w, b, *, normalize: bool,
                              eps: float = 1e-5, tm=None):
    """x: (..., D). Returns x with the last dim replaced by 1 (like nn.Linear(D, 1))."""
    orig_shape = x.shape
    d = orig_shape[-1]
    x2d = x.reshape(-1, d)
    n = x2d.shape[0]
    out_dtype = x.dtype
    in_itemsize = jnp.dtype(x.dtype).itemsize
    out_itemsize = jnp.dtype(out_dtype).itemsize

    # ---- Fold LayerNorm affine + linear bias into the weight (tiny wrapper-side ops).
    w_row = w.reshape(-1).astype(jnp.float32)                       # fc.weight is (1, D)
    if normalize:
        w_eff = w_row * gamma.reshape(-1).astype(jnp.float32)
        b_eff = (b.reshape(-1)[0].astype(jnp.float32)
                 + jnp.dot(beta.reshape(-1).astype(jnp.float32), w_row))
    else:
        w_eff = w_row
        b_eff = b.reshape(-1)[0].astype(jnp.float32)
    scal = jnp.stack([b_eff, jnp.sum(w_eff)]).astype(jnp.float32)   # [b_eff, sum(w_eff)]

    # ---- Lane packing for small D: pack k = 128//D logical rows per physical row.
    packed = (n > 0) and (d < 128) and (128 % d == 0) and (n % (128 // d) == 0)
    k = 128 // d if packed else 1
    if packed:
        x_in = x2d.reshape(n // k, k * d)                           # contiguous -> free
        seg = jnp.repeat(jnp.eye(k, dtype=jnp.float32), d, axis=0)  # (k*d, k) segment sums
        w_bd = (jnp.eye(k, dtype=jnp.float32)[:, None, :]
                * w_eff.reshape(1, d, 1)).reshape(k * d, k)         # block-diagonal w_eff
        w_arg = jnp.concatenate([seg, w_bd], axis=1) if normalize else w_bd
    else:
        x_in = x2d
        w_arg = w_eff.reshape(1, d)

    n_rows, width = x_in.shape
    out_cols = k if packed else 1

    # ---- Generation-aware VMEM budget.
    try:
        vmem_cap = int(pltpu.get_tpu_info().vmem_capacity_bytes)
    except Exception:
        vmem_cap = 64 * 1024 * 1024                                 # conservative (v7x per-TC)

    def lane_pad(c):
        return ((c + 127) // 128) * 128

    in_row_vmem = lane_pad(width) * in_itemsize                     # VMEM tiles are lane-padded
    in_row_hbm = width * in_itemsize                                # actual HBM bytes per row
    out_row_vmem = lane_pad(out_cols) * out_itemsize                # (tm, k)/(tm,1) lane-padded
    tmp_row = 3 * lane_pad(width) * 4                               # in-kernel f32 temporaries
    per_row_vmem = 2 * in_row_vmem + 2 * out_row_vmem + tmp_row     # double-buffered in/out

    # ---- Row-tile selection: size by bytes, not rows (mem-bound kernel).
    if tm is None:
        budget = max(int(0.5 * vmem_cap), 8 << 20)
        tm_fit = max(8, budget // per_row_vmem)
        tm_dma = max(8, (6 << 20) // max(in_row_hbm, 1))            # ~6 MiB HBM per grid step
        tm = min(tm_fit, tm_dma)
        # keep >= 2 grid steps when the problem is big enough (pipelining / two-TC split)
        tm = min(tm, max(8, (((n_rows + 1) // 2) + 7) // 8 * 8))
    tm = max(8, (int(tm) // 8) * 8)
    tm = min(tm, n_rows) if n_rows > 0 else tm                      # full-dim block if tiny N

    grid = pl.cdiv(n_rows, tm)      # ragged N: Pallas masks the boundary block, no jnp.pad

    vmem_needed = tm * per_row_vmem + (1 << 20)
    vmem_limit = int(min(max(vmem_needed + (4 << 20), 16 << 20), (vmem_cap * 3) // 4))

    flops = (6 if normalize else 2) * n * d
    cost = pl.CostEstimate(flops=flops,
                           transcendentals=(n if normalize else 0),
                           bytes_accessed=n * d * in_itemsize + n * out_itemsize)

    kernel = functools.partial(_classifier_kernel, normalize=normalize, packed=packed,
                               d=d, eps=eps)

    out2d = pl.pallas_call(
        kernel,
        out_shape=jax.ShapeDtypeStruct((n_rows, out_cols), out_dtype),
        grid_spec=pltpu.PrefetchScalarGridSpec(
            num_scalar_prefetch=0,
            grid=(grid,),
            in_specs=[
                pl.BlockSpec((tm, width), lambda i: (i, 0)),            # streamed x rows
                pl.BlockSpec(w_arg.shape, lambda i: (0, 0)),            # resident weight matrix
                pl.BlockSpec(memory_space=pltpu.MemorySpace.SMEM),      # [b_eff, sum(w_eff)]
            ],
            out_specs=pl.BlockSpec((tm, out_cols), lambda i: (i, 0)),
        ),
        compiler_params=pltpu.CompilerParams(
            dimension_semantics=("parallel",),
            vmem_limit_bytes=vmem_limit),
        cost_estimate=cost,
    )(x_in, w_arg, scal)

    return out2d.reshape(orig_shape[:-1] + (1,))


if __name__ == "__main__":
    key = jax.random.PRNGKey(0)
    k_x, k_w, k_g, k_b = jax.random.split(key, 4)

    B, S, D = 2, 8, 32          # batch=2, seq=8, embed_dim=32
    x = jax.random.normal(k_x, (B, S, D), dtype=jnp.float32)

    # Parameters: fc.weight ~ N(0, 0.01) per the PyTorch init; LayerNorm affine and the
    # linear bias are made non-trivial so the w_eff / b_eff fold is actually exercised.
    gamma = 1.0 + 0.1 * jax.random.normal(k_g, (D,), dtype=jnp.float32)
    beta = 0.05 * jax.random.normal(k_b, (D,), dtype=jnp.float32)
    fc_w = 0.01 * jax.random.normal(k_w, (1, D), dtype=jnp.float32)   # (out=1, in=D)
    fc_b = jnp.full((1,), 0.01, dtype=jnp.float32)

    def reference(xi, normalize):
        y = xi.astype(jnp.float32)
        if normalize:
            mean = jnp.mean(y, axis=-1, keepdims=True)
            var = jnp.mean((y - mean) ** 2, axis=-1, keepdims=True)
            y = (y - mean) / jnp.sqrt(var + 1e-5) * gamma + beta
        # elementwise form avoids any TPU matmul-precision ambiguity in the reference
        return jnp.sum(y * fc_w.reshape(-1), axis=-1, keepdims=True) + fc_b[0]

    # 1) LayerNorm + Linear, packed lane-dense path (N=16 divisible by 128//D=4).
    out = jax.block_until_ready(
        binary_classifier_forward(x, gamma, beta, fc_w, fc_b, normalize=True))
    assert out.shape == (B, S, 1)
    assert jnp.allclose(out, reference(x, True), atol=1e-5, rtol=1e-5)

    # 2) Linear-only path, packed.
    out2 = jax.block_until_ready(
        binary_classifier_forward(x, gamma, beta, fc_w, fc_b, normalize=False))
    assert jnp.allclose(out2, reference(x, False), atol=1e-5, rtol=1e-5)

    # 3) Ragged row count (N=15 not divisible by 4 -> unpacked path; boundary block is
    #    masked by Pallas, no padded copy of x in HBM).
    x3 = jax.random.normal(k_x, (3, 5, D), dtype=jnp.float32)
    out3 = jax.block_until_ready(
        binary_classifier_forward(x3, gamma, beta, fc_w, fc_b, normalize=True))
    assert out3.shape == (3, 5, 1)
    assert jnp.allclose(out3, reference(x3, True), atol=1e-5, rtol=1e-5)

    # 4) Ragged + linear-only (unpacked, non-normalized branch).
    out4 = jax.block_until_ready(
        binary_classifier_forward(x3, gamma, beta, fc_w, fc_b, normalize=False))
    assert jnp.allclose(out4, reference(x3, False), atol=1e-5, rtol=1e-5)

    print("KERNEL_OK")
</pallas_src>

<mosaic_0001>
module attributes {stable_mosaic.version = 11 : i64} {
  func.func @_classifier_kernel(%arg0: i32, %arg1: memref<4x128xf32, #tpu.memory_space<vmem>>, %arg2: memref<128x8xf32, #tpu.memory_space<vmem>>, %arg3: memref<2xf32, #tpu.memory_space<smem>>, %arg4: memref<4x4xf32, #tpu.memory_space<vmem>>) attributes {dimension_semantics = [#tpu.dimension_semantics<parallel>], iteration_bounds = array<i64: 1>, scalar_prefetch = 0 : i64, scratch_operands = 0 : i64, tpu.core_type = #tpu.core_type<tc>, window_params = [{transform_indices = @transform_0, window_bounds = array<i64: 4, 128>}, {pipeline_mode = #tpu.pipeline_mode<synchronous>, transform_indices = @transform_1, window_bounds = array<i64: 128, 8>}, {transform_indices = @transform_2, window_bounds = array<i64: 2>}, {transform_indices = @transform_3, window_bounds = array<i64: 4, 4>}]} {
    %c0 = arith.constant 0 : index
    %c0_0 = arith.constant 0 : index
    %0 = vector.load %arg1[%c0, %c0_0] : memref<4x128xf32, #tpu.memory_space<vmem>>, vector<4x128xf32>
    %c0_1 = arith.constant 0 : index
    %1 = memref.load %arg3[%c0_1] : memref<2xf32, #tpu.memory_space<smem>>
    %c0_2 = arith.constant 0 : index
    %c0_3 = arith.constant 0 : index
    %2 = vector.load %arg2[%c0_2, %c0_3] : memref<128x8xf32, #tpu.memory_space<vmem>>, vector<128x8xf32>
    %c1 = arith.constant 1 : index
    %3 = memref.load %arg3[%c1] : memref<2xf32, #tpu.memory_space<smem>>
    %cst = arith.constant dense<0.000000e+00> : vector<4x8xf32>
    %4 = tpu.matmul %0, %2, %cst {dimension_numbers = #tpu.dot_dimension_numbers<[1], [0], [0], [1], [0, 0, 1, 1], [], []>, precision = #tpu.contract_precision<fp32>} : vector<4x128xf32>, vector<128x8xf32>, vector<4x8xf32> -> vector<4x8xf32>
    %5 = vector.extract_strided_slice %4 {offsets = [0, 0], sizes = [4, 4], strides = [1, 1]} : vector<4x8xf32> to vector<4x4xf32>
    %6 = vector.extract_strided_slice %4 {offsets = [0, 4], sizes = [4, 4], strides = [1, 1]} : vector<4x8xf32> to vector<4x4xf32>
    %7 = arith.mulf %0, %0 : vector<4x128xf32>
    %8 = vector.extract_strided_slice %2 {offsets = [0, 0], sizes = [128, 4], strides = [1, 1]} : vector<128x8xf32> to vector<128x4xf32>
    %cst_4 = arith.constant dense<0.000000e+00> : vector<4x4xf32>
    %9 = tpu.matmul %7, %8, %cst_4 {dimension_numbers = #tpu.dot_dimension_numbers<[1], [0], [0], [1], [0, 0, 1, 1], [], []>, precision = #tpu.contract_precision<fp32>} : vector<4x128xf32>, vector<128x4xf32>, vector<4x4xf32> -> vector<4x4xf32>
    %cst_5 = arith.constant 3.125000e-02 : f32
    %10 = vector.broadcast %cst_5 : f32 to vector<4x4xf32>
    %11 = arith.mulf %5, %10 : vector<4x4xf32>
    %cst_6 = arith.constant 3.125000e-02 : f32
    %12 = vector.broadcast %cst_6 : f32 to vector<4x4xf32>
    %13 = arith.mulf %9, %12 : vector<4x4xf32>
    %14 = arith.mulf %11, %11 : vector<4x4xf32>
    %15 = arith.subf %13, %14 : vector<4x4xf32>
    %16 = vector.broadcast %3 : f32 to vector<4x4xf32>
    %17 = arith.mulf %11, %16 : vector<4x4xf32>
    %18 = arith.subf %6, %17 : vector<4x4xf32>
    %cst_7 = arith.constant 9.99999974E-6 : f32
    %19 = vector.broadcast %cst_7 : f32 to vector<4x4xf32>
    %20 = arith.addf %15, %19 : vector<4x4xf32>
    %21 = math.rsqrt %20 : vector<4x4xf32>
    %22 = arith.mulf %18, %21 : vector<4x4xf32>
    %23 = vector.broadcast %1 : f32 to vector<4x4xf32>
    %24 = arith.addf %22, %23 : vector<4x4xf32>
    %c0_8 = arith.constant 0 : index
    %c0_9 = arith.constant 0 : index
    %25 = vector.load %arg4[%c0_8, %c0_9] : memref<4x4xf32, #tpu.memory_space<vmem>>, vector<4x4xf32>
    tpu.vector_store %arg4[%c0_8, %c0_9], %24 {strides = array<i32>} : memref<4x4xf32, #tpu.memory_space<vmem>>, vector<4x4xf32>,
    return
  }
  func.func @transform_0(%arg0: i32) -> (i32, i32) {
    %c0_i32 = arith.constant 0 : i32
    %c0_i32_0 = arith.constant 0 : i32
    return %arg0, %c0_i32 : i32, i32
  }
  func.func @transform_1(%arg0: i32) -> (i32, i32) {
    %c0_i32 = arith.constant 0 : i32
    %c0_i32_0 = arith.constant 0 : i32
    %c0_i32_1 = arith.constant 0 : i32
    return %c0_i32, %c0_i32_0 : i32, i32
  }
  func.func @transform_2(%arg0: i32) -> i32 {
    %c0_i32 = arith.constant 0 : i32
    %c0_i32_0 = arith.constant 0 : i32
    return %c0_i32 : i32
  }
  func.func @transform_3(%arg0: i32) -> (i32, i32) {
    %c0_i32 = arith.constant 0 : i32
    %c0_i32_0 = arith.constant 0 : i32
    return %arg0, %c0_i32 : i32, i32
  }
}

</mosaic_0001>

<bundles_post_ra>
// kernel: tpu_custom_call.1
= control target key start
LH: loop header
LB: loop body
LE: loop exit
PB: predicated region body
PF: predicated region fallthrough
CT: control target
= control target key end

     0   :  { %8 = vsyncpa [#allocation4], 0  ;;  %s2801_s0 = inlined_call_operand.vmem [shape: f32[4,128], index: 0, kind: input, shape index: {}]   ;;  %s2802_s1 = inlined_call_operand.vmem [shape: f32[128,8], index: 1, kind: input, shape index: {}]   ;;  %s2803_s2 = inlined_call_operand.vmem [shape: f32[2], index: 2, kind: input, shape index: {}]   ;;  %s2804_s3 = inlined_call_operand.hbm [shape: f32[4,4], index: 3, kind: output, shape index: {}]  }
   0x1   :  { %9 = vsyncpa [#allocation3], 0  ;;  %s20_s14 = sshll.u32 %s2803_s2, 4  ;;  %s21_s14 = int_to_ptr.vmem [resolvable:$true] %s20_s14 }
   0x2   :  { %s2313_s15 = scalar_lea.vmem %s21_s14, 16  ;;  %p2318_p1 = scmp.lt.s32.totalorder %s21_s14, %s21_s14 }
   0x3   :  { %p2314_p0 = scmp.ne.s32.totalorder %s21_s14, %s2313_s15  ;;  %p2319_p2 = scmp.lt.s32.totalorder %s2313_s15, %s2313_s15 }
   0x5   :  { %p2320_p3 = por %p2319_p2, %p2318_p1 }
   0x7   :  { %p2321_p4 = pnand %p2320_p3, %p2314_p0 }
   0x9   :  { %2324 = shalt.err (!%p2321_p4)
}
   0xa   :  { %s2351_s16 = smov [#allocation2]  }
   0xb   :  { %23 = dma.vmem_to_smem %s21_s14, 16, %s2351_s16, [#allocation4]  }
   0xc   :  { %2347 = dma.done.wait [#allocation4], 16  }
   0xd   :  { %2348 = vsyncadd [#allocation4], 4294967280 }
   0xe   :  { %27 = sfence }
   0xf   :  { %v30_v0 = vld [vmem:[%s2802_s1] sm:$0xff]  ;;  %v31_v1 = vld [vmem:[%s2802_s1 + $0x8] sm:$0xff]  ;;  %v32_v2 = vld [vmem:[%s2802_s1 + $0x10] sm:$0xff]  ;;  %v2352_v3 = vmov 0.0|0.0   ;;  %vm2353_vm0 = vmmov 0   ;;  %v2354_v11 = vmov 0.0  }
  0x10   :  { %1996 = vmatprep.subr.bf16.mxu0 %v2352_v3  ;;  %2140 = vmatprep.subr.bf16.mxu1 %v2352_v3  ;;  %v48_v4 = vand.u32 4294901760, %v30_v0  ;;  %v51_v5 = vand.u32 4294901760, %v31_v1  ;;  %v2395_v6 = vld [vmem:[%s2802_s1 + $0x18] sm:$0xff]  ;;  %v54_v7 = vand.u32 4294901760, %v32_v2  ;;  %v2401_v9 = vld [vmem:[%s2802_s1 + $0x20] sm:$0xff]  ;;  %v2406_v10 = vld [vmem:[%s2802_s1 + $0x28] sm:$0xff] }
  0x11   :  { %v57_v8 = vand.u32 4294901760, %v2395_v6  ;;  %1608 = vmatprep.mubr.msk.f32.mxu0 %vm2353_vm0, %v2354_v11  ;;  %1818 = vmatprep.mubr.msk.f32.mxu1 %vm2353_vm0, %v2354_v11  ;;  %v60_v14 = vand.u32 4294901760, %v2401_v9  ;;  %v63_v15 = vand.u32 4294901760, %v2406_v10  ;;  %v2425_v16 = vld [vmem:[%s2802_s1 + $0x30] sm:$0xff]  ;;  %v2430_v17 = vld [vmem:[%s2802_s1 + $0x38] sm:$0xff]  ;;  %v38_v22 = vld [vmem:[%s2802_s1 + $0x40] sm:$0xff] }
  0x12   :  { %v2412_v12 = vpack.c.bf16 %v51_v5, %v48_v4  ;;  %v28_v18 = vld [vmem:[%s2801_s0] sm:$0xf]  ;;  %v66_v20 = vand.u32 4294901760, %v2425_v16  ;;  %v69_v21 = vand.u32 4294901760, %v2430_v17  ;;  %v39_v23 = vld [vmem:[%s2802_s1 + $0x48] sm:$0xff]  ;;  %v40_v26 = vld [vmem:[%s2802_s1 + $0x50] sm:$0xff]  ;;  %v2473_v35 = vsub.f32 %v30_v0, %v48_v4 }
  0x13   :  { %v2416_v13 = vpack.c.bf16 %v57_v8, %v54_v7  ;;  %v2437_v19 = vpack.c.bf16 %v63_v15, %v60_v14  ;;  %v2449_v24 = vand.u32 4294901760, %v28_v18  ;;  %v688_v25 = vmul.f32 %v28_v18, %v28_v18  ;;  %v41_v27 = vld [vmem:[%s2802_s1 + $0x58] sm:$0xff]  ;;  %v42_v28 = vld [vmem:[%s2802_s1 + $0x60] sm:$0xff]  ;;  %v43_v32 = vld [vmem:[%s2802_s1 + $0x68] sm:$0xff]  ;;  %s2355_s21 = smov 4   ;;  %s29_s22 = sld [smem:[#allocation2]] }
  0x14   :  { %1998 = vmatpush3.bf16.msra.mxu0 %v2412_v12  ;;  %2142 = vmatpush3.bf16.msra.mxu1 %v2412_v12  ;;  %v2462_v29 = vpack.c.bf16 %v69_v21, %v66_v20  ;;  %v72_v30 = vand.u32 4294901760, %v38_v22  ;;  %v75_v31 = vand.u32 4294901760, %v39_v23  ;;  %v44_v33 = vld [vmem:[%s2802_s1 + $0x70] sm:$0xff]  ;;  %v45_v34 = vld [vmem:[%s2802_s1 + $0x78] sm:$0xff]  ;;  %v2480_v37 = vsub.f32 %v31_v1, %v51_v5  ;;  %s1371_s1 = sld [smem:[#allocation2 + $0x1]]  ;;  %s2356_s23 = smov 124  }
  0x15   :  { %1999 = vmatprep.subr.bf16.mxu0 %v2352_v3  ;;  %2143 = vmatprep.subr.bf16.mxu1 %v2352_v3  ;;  %v2478_v36 = vsub.f32 %v28_v18, %v2449_v24  ;;  %v2482_v38 = vsub.f32 %v32_v2, %v54_v7  ;;  %v78_v39 = vand.u32 4294901760, %v40_v26  ;;  %v81_v40 = vand.u32 4294901760, %v41_v27  ;;  %s2357_s24 = smov [#allocation5]  }
  0x16   :  { %v2484_v41 = vand.u32 4294901760, %v688_v25  ;;  %v84_v42 = vand.u32 4294901760, %v42_v28  ;;  %v87_v43 = vand.u32 4294901760, %v43_v32  ;;  %v90_v44 = vand.u32 4294901760, %v44_v33  ;;  %s1362_s25 = sshll.u32 %s2357_s24, 4  ;;  %s1363_s25 = int_to_ptr.vmem [resolvable:$true] %s1362_s25 }
  0x17   :  { %v93_v45 = vand.u32 4294901760, %v45_v34  ;;  %v2488_v46 = vpack.c.bf16 %v75_v31, %v72_v30  ;;  %v141_v47 = vand.u32 4294901760, %v2473_v35  ;;  %v2806_v48 = vand.u32 4294901760, %v2478_v36  ;;  %s2325_s26 = scalar_lea.vmem %s1363_s25, 64  ;;  %p2330_p6 = scmp.lt.s32.totalorder %s1363_s25, %s1363_s25 }
  0x18   :  { %2001 = vmatpush3.bf16.msra.mxu0 %v2416_v13  ;;  %2145 = vmatpush3.bf16.msra.mxu1 %v2416_v13  ;;  %v148_v49 = vand.u32 4294901760, %v2480_v37  ;;  %v155_v50 = vand.u32 4294901760, %v2482_v38  ;;  %v2497_v51 = vsub.f32 %v2395_v6, %v57_v8  ;;  %v2500_v52 = vsub.f32 %v688_v25, %v2484_v41  ;;  %p2326_p5 = scmp.ne.s32.totalorder %s1363_s25, %s2325_s26  ;;  %p2331_p7 = scmp.lt.s32.totalorder %s2325_s26, %s2325_s26 }
  0x19   :  { %2002 = vmatprep.subr.bf16.mxu0 %v2352_v3  ;;  %2146 = vmatprep.subr.bf16.mxu1 %v2352_v3  ;;  %v2502_v53 = vpack.c.bf16 %v81_v40, %v78_v39  ;;  %v2504_v54 = vpack.c.bf16 %v87_v43, %v84_v42  ;;  %v2506_v55 = vpack.c.bf16 %v93_v45, %v90_v44  ;;  %vm1354_vm1 = vcmask 27648  }
  0x1a   :  { %v142_v56 = vsub.f32 %v2473_v35, %v141_v47  ;;  %v2512_v57 = vsub.f32 %v2401_v9, %v60_v14  ;;  %v2515_v58 = vsub.f32 %v2406_v10, %v63_v15  ;;  %v131_v59 = vsub.f32 %v2478_v36, %v2806_v48  ;;  %p2332_p8 = por %p2331_p7, %p2330_p6 }
  0x1b   :  { %v149_v60 = vsub.f32 %v2480_v37, %v148_v49  ;;  %v2524_v61 = vsub.f32 %v2482_v38, %v155_v50  ;;  %v162_v62 = vand.u32 4294901760, %v2497_v51  ;;  %v2805_v63 = vand.u32 4294901760, %v2500_v52 }
  0x1c   :  { %2004 = vmatpush3.bf16.msra.mxu0 %v2437_v19  ;;  %2148 = vmatpush3.bf16.msra.mxu1 %v2437_v19  ;;  %v2529_v0 = vsub.f32 %v2425_v16, %v66_v20  ;;  %v2532_v1 = vsub.f32 %v2430_v17, %v69_v21  ;;  %v2534_v2 = vsub.f32 %v38_v22, %v72_v30  ;;  %v169_v8 = vand.u32 4294901760, %v2512_v57  ;;  %p2333_p9 = pnand %p2332_p8, %p2326_p5 }
  0x1d   :  { %2005 = vmatprep.subr.bf16.mxu0 %v2352_v3  ;;  %2149 = vmatprep.subr.bf16.mxu1 %v2352_v3  ;;  %v2536_v4 = vsub.f32 %v39_v23, %v75_v31  ;;  %v2538_v5 = vsub.f32 %v40_v26, %v78_v39  ;;  %v2540_v6 = vsub.f32 %v41_v27, %v81_v40  ;;  %v143_v15 = vand.u32 4294901760, %v142_v56 }
  0x1e   :  { %v2542_v7 = vsub.f32 %v42_v28, %v84_v42  ;;  %v2547_v9 = vsub.f32 %v43_v32, %v87_v43  ;;  %v2549_v10 = vsub.f32 %v44_v33, %v90_v44  ;;  %v2551_v14 = vsub.f32 %v45_v34, %v93_v45 }
  0x1f   :  { %v150_v16 = vand.u32 4294901760, %v149_v60  ;;  %v163_v17 = vsub.f32 %v2497_v51, %v162_v62  ;;  %v176_v18 = vand.u32 4294901760, %v2515_v58  ;;  %v773_v20 = vsub.f32 %v2500_v52, %v2805_v63 }
  0x20   :  { %2007 = vmatpush3.bf16.msra.mxu0 %v2462_v29  ;;  %2151 = vmatpush3.bf16.msra.mxu1 %v2462_v29  ;;  %v183_v21 = vand.u32 4294901760, %v2529_v0  ;;  %v190_v22 = vand.u32 4294901760, %v2532_v1  ;;  %v197_v23 = vand.u32 4294901760, %v2534_v2  ;;  %v204_v25 = vand.u32 4294901760, %v2536_v4 }
  0x21   :  { %2008 = vmatprep.subr.bf16.mxu0 %v2352_v3  ;;  %2152 = vmatprep.subr.bf16.mxu1 %v2352_v3  ;;  %v211_v26 = vand.u32 4294901760, %v2538_v5  ;;  %v218_v27 = vand.u32 4294901760, %v2540_v6  ;;  %v225_v28 = vand.u32 4294901760, %v2542_v7  ;;  %v232_v30 = vand.u32 4294901760, %v2547_v9 }
  0x22   :  { %v239_v31 = vand.u32 4294901760, %v2549_v10  ;;  %v246_v32 = vand.u32 4294901760, %v2551_v14  ;;  %v2572_v33 = vpack.c.bf16 %v148_v49, %v141_v47  ;;  %v2576_v34 = vpack.c.bf16 %v162_v62, %v155_v50 }
  0x23   :  { %v2578_v39 = vpack.c.bf16 %v176_v18, %v169_v8  ;;  %v2580_v40 = vpack.c.bf16 %v190_v22, %v183_v21  ;;  %v2582_v42 = vpack.c.bf16 %v204_v25, %v197_v23  ;;  %v2584_v43 = vpack.c.bf16 %v218_v27, %v211_v26 }
  0x24   :  { %2010 = vmatpush3.bf16.msra.mxu0 %v2488_v46  ;;  %2154 = vmatpush3.bf16.msra.mxu1 %v2488_v46  ;;  %v2586_v44 = vpack.c.bf16 %v232_v30, %v225_v28  ;;  %v2592_v45 = vpack.c.bf16 %v246_v32, %v239_v31  ;;  %v132_v47 = vand.u32 4294901760, %v131_v59  ;;  %v774_v49 = vand.u32 4294901760, %v773_v20 }
  0x25   :  { %2011 = vmatprep.subr.bf16.mxu0 %v2352_v3  ;;  %2155 = vmatprep.subr.bf16.mxu1 %v2352_v3  ;;  %v170_v50 = vsub.f32 %v2512_v57, %v169_v8  ;;  %v177_v56 = vsub.f32 %v2515_v58, %v176_v18  ;;  %v2021_v60 = vpack.c.bf16 %v150_v16, %v143_v15  ;;  %v157_v62 = vand.u32 4294901760, %v2524_v61 }
  0x26   :  { %v164_v63 = vand.u32 4294901760, %v163_v17  ;;  %v184_v18 = vsub.f32 %v2529_v0, %v183_v21  ;;  %v191_v48 = vsub.f32 %v2532_v1, %v190_v22  ;;  %v205_v17 = vsub.f32 %v2536_v4, %v204_v25 }
  0x27   :  { %v171_v59 = vand.u32 4294901760, %v170_v50  ;;  %v178_v20 = vand.u32 4294901760, %v177_v56  ;;  %v212_v21 = vsub.f32 %v2538_v5, %v211_v26  ;;  %v219_v50 = vsub.f32 %v2540_v6, %v218_v27 }
  0x28   :  { %2013 = vmatpush3.bf16.msra.mxu0 %v2502_v53  ;;  %2157 = vmatpush3.bf16.msra.mxu1 %v2502_v53  ;;  %v2024_v8 = vpack.c.bf16 %v164_v63, %v157_v62  ;;  %v185_v15 = vand.u32 4294901760, %v184_v18  ;;  %v192_v16 = vand.u32 4294901760, %v191_v48  ;;  %v198_v63 = vsub.f32 %v2534_v2, %v197_v23 }
  0x29   :  { %2014 = vmatprep.subr.bf16.mxu0 %v2352_v3  ;;  %2158 = vmatprep.subr.bf16.mxu1 %v2352_v3  ;;  %v2027_v61 = vpack.c.bf16 %v178_v20, %v171_v59  ;;  %v226_v48 = vsub.f32 %v2542_v7, %v225_v28  ;;  %v213_v25 = vand.u32 4294901760, %v212_v21  ;;  %v220_v56 = vand.u32 4294901760, %v219_v50 }
  0x2a   :  { %v2030_v22 = vpack.c.bf16 %v192_v16, %v185_v15  ;;  %v233_v26 = vsub.f32 %v2547_v9, %v232_v30  ;;  %v240_v28 = vsub.f32 %v2549_v10, %v239_v31  ;;  %v247_v59 = vsub.f32 %v2551_v14, %v246_v32 }
  0x2b   :  { %v2036_v27 = vpack.c.bf16 %v220_v56, %v213_v25  ;;  %v2045_v32 = vpack.c.bf16 %v2480_v37, %v2473_v35  ;;  %v2048_v18 = vpack.c.bf16 %v2497_v51, %v2482_v38  ;;  %v2051_v35 = vpack.c.bf16 %v2515_v58, %v2512_v57 }
  0x2c   :  { %2016 = vmatpush3.bf16.msra.mxu0 %v2504_v54  ;;  %2160 = vmatpush3.bf16.msra.mxu1 %v2504_v54  ;;  %v234_v62 = vand.u32 4294901760, %v233_v26  ;;  %v241_v20 = vand.u32 4294901760, %v240_v28  ;;  %v2054_v37 = vpack.c.bf16 %v2532_v1, %v2529_v0  ;;  %v2057_v38 = vpack.c.bf16 %v2536_v4, %v2534_v2 }
  0x2d   :  { %2017 = vmatprep.subr.bf16.mxu0 %v2352_v3  ;;  %2161 = vmatprep.subr.bf16.mxu1 %v2352_v3  ;;  %v2060_v51 = vpack.c.bf16 %v2540_v6, %v2538_v5  ;;  %v2063_v57 = vpack.c.bf16 %v2547_v9, %v2542_v7  ;;  %v2066_v58 = vpack.c.bf16 %v2551_v14, %v2549_v10  ;;  %v2807_v0 = vand.u32 4294901760, %v2478_v36 }
  0x2e   :  { %v2808_v1 = vand.u32 4294901760, %v2500_v52  ;;  %v1348_v4 = vstv %s29_s22 }
  0x30   :  { %2019 = vmatpush3.bf16.msra.mxu0 %v2506_v55  ;;  %2163 = vmatpush3.bf16.msra.mxu1 %v2506_v55 }
  0x31   :  { %2020 = vmatprep.subr.bf16.mxu0 %v2352_v3  ;;  %2164 = vmatprep.subr.bf16.mxu1 %v2352_v3 }
  0x33   :  { %1609 = vmatmul.mubr.f32.vlgmr.msra.gmra.mrb[0].mxu0 %v132_v47  ;;  %1819 = vmatmul.mubr.f32.vlgmr.msra.gmra.mrb[0].mxu1 %v774_v49  ;;  %v199_v47 = vand.u32 4294901760, %v198_v63  ;;  %v206_v49 = vand.u32 4294901760, %v205_v17 }
  0x34   :  { %2022 = vmatpush3.bf16.msra.mxu0 %v2021_v60  ;;  %2166 = vmatpush3.bf16.msra.mxu1 %v2021_v60  ;;  %v227_v60 = vand.u32 4294901760, %v226_v48 }
  0x35   :  { %2023 = vmatprep.subr.bf16.mxu0 %v2352_v3  ;;  %2167 = vmatprep.subr.bf16.mxu1 %v2352_v3  ;;  %v2033_v23 = vpack.c.bf16 %v206_v49, %v199_v47 }
  0x36   :  { %1643 = vmatprep.mubr.msk.f32.mxu0 %vm2353_vm0, %v2354_v11  ;;  %1853 = vmatprep.mubr.msk.f32.mxu1 %vm2353_vm0, %v2354_v11  ;;  %v2039_v30 = vpack.c.bf16 %v234_v62, %v227_v60 }
  0x38   :  { %2025 = vmatpush3.bf16.msra.mxu0 %v2024_v8  ;;  %2169 = vmatpush3.bf16.msra.mxu1 %v2024_v8  ;;  %v248_v8 = vand.u32 4294901760, %v247_v59 }
  0x39   :  { %2026 = vmatprep.subr.bf16.mxu0 %v2352_v3  ;;  %2170 = vmatprep.subr.bf16.mxu1 %v2352_v3 }
  0x3a   :  { %v2042_v31 = vpack.c.bf16 %v248_v8, %v241_v20 }
  0x3c   :  { %2028 = vmatpush3.bf16.msra.mxu0 %v2027_v61  ;;  %2172 = vmatpush3.bf16.msra.mxu1 %v2027_v61 }
  0x3d   :  { %2029 = vmatprep.subr.bf16.mxu0 %v2352_v3  ;;  %2173 = vmatprep.subr.bf16.mxu1 %v2352_v3 }
  0x40   :  { %2031 = vmatpush3.bf16.msra.mxu0 %v2030_v22  ;;  %2175 = vmatpush3.bf16.msra.mxu1 %v2030_v22 }
  0x41   :  { %2032 = vmatprep.subr.bf16.mxu0 %v2352_v3  ;;  %2176 = vmatprep.subr.bf16.mxu1 %v2352_v3 }
  0x44   :  { %2034 = vmatpush3.bf16.msra.mxu0 %v2033_v23  ;;  %2178 = vmatpush3.bf16.msra.mxu1 %v2033_v23 }
  0x45   :  { %2035 = vmatprep.subr.bf16.mxu0 %v2352_v3  ;;  %2179 = vmatprep.subr.bf16.mxu1 %v2352_v3 }
  0x48   :  { %2037 = vmatpush3.bf16.msra.mxu0 %v2036_v27  ;;  %2181 = vmatpush3.bf16.msra.mxu1 %v2036_v27 }
  0x49   :  { %2038 = vmatprep.subr.bf16.mxu0 %v2352_v3  ;;  %2182 = vmatprep.subr.bf16.mxu1 %v2352_v3 }
  0x4c   :  { %2040 = vmatpush3.bf16.msra.mxu0 %v2039_v30  ;;  %2184 = vmatpush3.bf16.msra.mxu1 %v2039_v30 }
  0x4d   :  { %2041 = vmatprep.subr.bf16.mxu0 %v2352_v3  ;;  %2185 = vmatprep.subr.bf16.mxu1 %v2352_v3 }
  0x50   :  { %2043 = vmatpush3.bf16.msra.mxu0 %v2042_v31  ;;  %2187 = vmatpush3.bf16.msra.mxu1 %v2042_v31 }
  0x51   :  { %2044 = vmatprep.subr.bf16.mxu0 %v2352_v3  ;;  %2188 = vmatprep.subr.bf16.mxu1 %v2352_v3 }
  0x53   :  { %1644 = vmatmul.mubr.f32.vlgmr.msra.gmra.mrb[0].mxu0 %v2449_v24  ;;  %1854 = vmatmul.mubr.f32.vlgmr.msra.gmra.mrb[0].mxu1 %v2484_v41 }
  0x54   :  { %2046 = vmatpush3.bf16.msra.mxu0 %v2045_v32  ;;  %2190 = vmatpush3.bf16.msra.mxu1 %v2045_v32 }
  0x55   :  { %2047 = vmatprep.subr.bf16.mxu0 %v2352_v3  ;;  %2191 = vmatprep.subr.bf16.mxu1 %v2352_v3 }
  0x56   :  { %1678 = vmatprep.mubr.msk.f32.mxu0 %vm2353_vm0, %v2354_v11  ;;  %1888 = vmatprep.mubr.msk.f32.mxu1 %vm2353_vm0, %v2354_v11 }
  0x58   :  { %2049 = vmatpush3.bf16.msra.mxu0 %v2048_v18  ;;  %2193 = vmatpush3.bf16.msra.mxu1 %v2048_v18 }
  0x59   :  { %2050 = vmatprep.subr.bf16.mxu0 %v2352_v3  ;;  %2194 = vmatprep.subr.bf16.mxu1 %v2352_v3 }
  0x5c   :  { %2052 = vmatpush3.bf16.msra.mxu0 %v2051_v35  ;;  %2196 = vmatpush3.bf16.msra.mxu1 %v2051_v35 }
  0x5d   :  { %2053 = vmatprep.subr.bf16.mxu0 %v2352_v3  ;;  %2197 = vmatprep.subr.bf16.mxu1 %v2352_v3 }
  0x60   :  { %2055 = vmatpush3.bf16.msra.mxu0 %v2054_v37  ;;  %2199 = vmatpush3.bf16.msra.mxu1 %v2054_v37 }
  0x61   :  { %2056 = vmatprep.subr.bf16.mxu0 %v2352_v3  ;;  %2200 = vmatprep.subr.bf16.mxu1 %v2352_v3 }
  0x64   :  { %2058 = vmatpush3.bf16.msra.mxu0 %v2057_v38  ;;  %2202 = vmatpush3.bf16.msra.mxu1 %v2057_v38 }
  0x65   :  { %2059 = vmatprep.subr.bf16.mxu0 %v2352_v3  ;;  %2203 = vmatprep.subr.bf16.mxu1 %v2352_v3 }
  0x68   :  { %2061 = vmatpush3.bf16.msra.mxu0 %v2060_v51  ;;  %2205 = vmatpush3.bf16.msra.mxu1 %v2060_v51 }
  0x69   :  { %2062 = vmatprep.subr.bf16.mxu0 %v2352_v3  ;;  %2206 = vmatprep.subr.bf16.mxu1 %v2352_v3 }
  0x6c   :  { %2064 = vmatpush3.bf16.msra.mxu0 %v2063_v57  ;;  %2208 = vmatpush3.bf16.msra.mxu1 %v2063_v57 }
  0x6d   :  { %2065 = vmatprep.subr.bf16.mxu0 %v2352_v3  ;;  %2209 = vmatprep.subr.bf16.mxu1 %v2352_v3 }
  0x70   :  { %2067 = vmatpush3.bf16.msra.mxu0 %v2066_v58  ;;  %2211 = vmatpush3.bf16.msra.mxu1 %v2066_v58 }
  0x71   :  { %2068 = vmatprep.subr.bf16.mxu0 %v2352_v3  ;;  %2212 = vmatprep.subr.bf16.mxu1 %v2352_v3 }
  0x73   :  { %1679 = vmatmul.mubr.f32.vlgmr.msra.gmra.mrb[0].mxu0 %v2478_v36  ;;  %1889 = vmatmul.mubr.f32.vlgmr.msra.gmra.mrb[0].mxu1 %v2500_v52 }
  0x74   :  { %2070 = vmatpush3.bf16.msra.mxu0 %v2412_v12  ;;  %2214 = vmatpush3.bf16.msra.mxu1 %v2412_v12 }
  0x75   :  { %2071 = vmatprep.subr.bf16.mxu0 %v2352_v3  ;;  %2215 = vmatprep.subr.bf16.mxu1 %v2352_v3 }
  0x76   :  { %1713 = vmatprep.mubr.msk.f32.mxu0 %vm2353_vm0, %v2354_v11  ;;  %1923 = vmatprep.mubr.msk.f32.mxu1 %vm2353_vm0, %v2354_v11 }
  0x78   :  { %2073 = vmatpush3.bf16.msra.mxu0 %v2416_v13  ;;  %2217 = vmatpush3.bf16.msra.mxu1 %v2416_v13 }
  0x79   :  { %2074 = vmatprep.subr.bf16.mxu0 %v2352_v3  ;;  %2218 = vmatprep.subr.bf16.mxu1 %v2352_v3 }
  0x7c   :  { %2076 = vmatpush3.bf16.msra.mxu0 %v2437_v19  ;;  %2220 = vmatpush3.bf16.msra.mxu1 %v2437_v19 }
  0x7d   :  { %2077 = vmatprep.subr.bf16.mxu0 %v2352_v3  ;;  %2221 = vmatprep.subr.bf16.mxu1 %v2352_v3 }
  0x80   :  { %2079 = vmatpush3.bf16.msra.mxu0 %v2462_v29  ;;  %2223 = vmatpush3.bf16.msra.mxu1 %v2462_v29 }
  0x81   :  { %2080 = vmatprep.subr.bf16.mxu0 %v2352_v3  ;;  %2224 = vmatprep.subr.bf16.mxu1 %v2352_v3 }
  0x84   :  { %2082 = vmatpush3.bf16.msra.mxu0 %v2488_v46  ;;  %2226 = vmatpush3.bf16.msra.mxu1 %v2488_v46 }
  0x85   :  { %2083 = vmatprep.subr.bf16.mxu0 %v2352_v3  ;;  %2227 = vmatprep.subr.bf16.mxu1 %v2352_v3 }
  0x88   :  { %2085 = vmatpush3.bf16.msra.mxu0 %v2502_v53  ;;  %2229 = vmatpush3.bf16.msra.mxu1 %v2502_v53 }
  0x89   :  { %2086 = vmatprep.subr.bf16.mxu0 %v2352_v3  ;;  %2230 = vmatprep.subr.bf16.mxu1 %v2352_v3 }
  0x8c   :  { %2088 = vmatpush3.bf16.msra.mxu0 %v2504_v54  ;;  %2232 = vmatpush3.bf16.msra.mxu1 %v2504_v54 }
  0x8d   :  { %2089 = vmatprep.subr.bf16.mxu0 %v2352_v3  ;;  %2233 = vmatprep.subr.bf16.mxu1 %v2352_v3 }
  0x90   :  { %2091 = vmatpush3.bf16.msra.mxu0 %v2506_v55  ;;  %2235 = vmatpush3.bf16.msra.mxu1 %v2506_v55 }
  0x91   :  { %2092 = vmatprep.subr.bf16.mxu0 %v2352_v3  ;;  %2236 = vmatprep.subr.bf16.mxu1 %v2352_v3 }
  0x93   :  { %1714 = vmatmul.mubr.f32.vlgmr.msra.gmra.mrb[0].mxu0 %v2807_v0  ;;  %1924 = vmatmul.mubr.f32.vlgmr.msra.gmra.mrb[0].mxu1 %v2808_v1 }
  0x94   :  { %2094 = vmatpush3.bf16.msra.mxu0 %v2572_v33  ;;  %2238 = vmatpush3.bf16.msra.mxu1 %v2572_v33 }
  0x95   :  { %2095 = vmatprep.subr.bf16.mxu0 %v2352_v3  ;;  %2239 = vmatprep.subr.bf16.mxu1 %v2352_v3 }
  0x96   :  { %1748 = vmatprep.mubr.msk.f32.mxu0 %vm2353_vm0, %v2354_v11  ;;  %1958 = vmatprep.mubr.msk.f32.mxu1 %vm2353_vm0, %v2354_v11 }
  0x98   :  { %2097 = vmatpush3.bf16.msra.mxu0 %v2576_v34  ;;  %2241 = vmatpush3.bf16.msra.mxu1 %v2576_v34 }
  0x99   :  { %2098 = vmatprep.subr.bf16.mxu0 %v2352_v3  ;;  %2242 = vmatprep.subr.bf16.mxu1 %v2352_v3 }
  0x9c   :  { %2100 = vmatpush3.bf16.msra.mxu0 %v2578_v39  ;;  %2244 = vmatpush3.bf16.msra.mxu1 %v2578_v39 }
  0x9d   :  { %2101 = vmatprep.subr.bf16.mxu0 %v2352_v3  ;;  %2245 = vmatprep.subr.bf16.mxu1 %v2352_v3 }
  0xa0   :  { %2103 = vmatpush3.bf16.msra.mxu0 %v2580_v40  ;;  %2247 = vmatpush3.bf16.msra.mxu1 %v2580_v40 }
  0xa1   :  { %2104 = vmatprep.subr.bf16.mxu0 %v2352_v3  ;;  %2248 = vmatprep.subr.bf16.mxu1 %v2352_v3 }
  0xa4   :  { %2106 = vmatpush3.bf16.msra.mxu0 %v2582_v42  ;;  %2250 = vmatpush3.bf16.msra.mxu1 %v2582_v42 }
  0xa5   :  { %2107 = vmatprep.subr.bf16.mxu0 %v2352_v3  ;;  %2251 = vmatprep.subr.bf16.mxu1 %v2352_v3 }
  0xa8   :  { %2109 = vmatpush3.bf16.msra.mxu0 %v2584_v43  ;;  %2253 = vmatpush3.bf16.msra.mxu1 %v2584_v43 }
  0xa9   :  { %2110 = vmatprep.subr.bf16.mxu0 %v2352_v3  ;;  %2254 = vmatprep.subr.bf16.mxu1 %v2352_v3 }
  0xac   :  { %2112 = vmatpush3.bf16.msra.mxu0 %v2586_v44  ;;  %2256 = vmatpush3.bf16.msra.mxu1 %v2586_v44 }
  0xad   :  { %2113 = vmatprep.subr.bf16.mxu0 %v2352_v3  ;;  %2257 = vmatprep.subr.bf16.mxu1 %v2352_v3 }
  0xb0   :  { %2115 = vmatpush3.bf16.msra.mxu0 %v2592_v45  ;;  %2259 = vmatpush3.bf16.msra.mxu1 %v2592_v45 }
  0xb1   :  { %2116 = vmatprep.subr.bf16.mxu0 %v2352_v3  ;;  %2260 = vmatprep.subr.bf16.mxu1 %v2352_v3 }
  0xb3   :  { %1749 = vmatmul.mubr.f32.vlgmr.msra.gmra.mrb[0].mxu0 %v2449_v24  ;;  %1959 = vmatmul.mubr.f32.vlgmr.msra.gmra.mrb[0].mxu1 %v2484_v41 }
  0xb4   :  { %2118 = vmatpush3.bf16.msra.mxu0 %v2412_v12  ;;  %2262 = vmatpush3.bf16.msra.mxu1 %v2412_v12 }
  0xb5   :  { %2119 = vmatprep.subr.bf16.mxu0 %v2352_v3  ;;  %2263 = vmatprep.subr.bf16.mxu1 %v2352_v3 }
  0xb6   :  { %1783 = vmatprep.mubr.msk.f32.mxu0 %vm2353_vm0, %v2354_v11  ;;  %1993 = vmatprep.mubr.msk.f32.mxu1 %vm2353_vm0, %v2354_v11 }
  0xb8   :  { %2121 = vmatpush3.bf16.msra.mxu0 %v2416_v13  ;;  %2265 = vmatpush3.bf16.msra.mxu1 %v2416_v13  ;;  %v1334_v13 = vstv %s1371_s1 }
  0xb9   :  { %2122 = vmatprep.subr.bf16.mxu0 %v2352_v3  ;;  %2266 = vmatprep.subr.bf16.mxu1 %v2352_v3 }
  0xbc   :  { %2124 = vmatpush3.bf16.msra.mxu0 %v2437_v19  ;;  %2268 = vmatpush3.bf16.msra.mxu1 %v2437_v19 }
  0xbd   :  { %2125 = vmatprep.subr.bf16.mxu0 %v2352_v3  ;;  %2269 = vmatprep.subr.bf16.mxu1 %v2352_v3 }
  0xc0   :  { %2127 = vmatpush3.bf16.msra.mxu0 %v2462_v29  ;;  %2271 = vmatpush3.bf16.msra.mxu1 %v2462_v29 }
  0xc1   :  { %2128 = vmatprep.subr.bf16.mxu0 %v2352_v3  ;;  %2272 = vmatprep.subr.bf16.mxu1 %v2352_v3 }
  0xc4   :  { %2130 = vmatpush3.bf16.msra.mxu0 %v2488_v46  ;;  %2274 = vmatpush3.bf16.msra.mxu1 %v2488_v46 }
  0xc5   :  { %2131 = vmatprep.subr.bf16.mxu0 %v2352_v3  ;;  %2275 = vmatprep.subr.bf16.mxu1 %v2352_v3 }
  0xc8   :  { %2133 = vmatpush3.bf16.msra.mxu0 %v2502_v53  ;;  %2277 = vmatpush3.bf16.msra.mxu1 %v2502_v53 }
  0xc9   :  { %2134 = vmatprep.subr.bf16.mxu0 %v2352_v3  ;;  %2278 = vmatprep.subr.bf16.mxu1 %v2352_v3 }
  0xcc   :  { %2136 = vmatpush3.bf16.msra.mxu0 %v2504_v54  ;;  %2280 = vmatpush3.bf16.msra.mxu1 %v2504_v54 }
  0xcd   :  { %2137 = vmatprep.subr.bf16.mxu0 %v2352_v3  ;;  %2281 = vmatprep.subr.bf16.mxu1 %v2352_v3 }
  0xd0   :  { %2139 = vmatpush3.bf16.msra.mxu0 %v2506_v55  ;;  %2283 = vmatpush3.bf16.msra.mxu1 %v2506_v55 }
  0xd3   :  { %1784 = vmatmul.mubr.f32.vlgmr.msra.gmra.mrb[0].mxu0 %v2449_v24  ;;  %1994 = vmatmul.mubr.f32.vlgmr.msra.gmra.mrb[0].mxu1 %v2484_v41 }
 0x1a6   :  { %v684_v11 = vpop.f32.mrb[0].mxu0  ;;  %v1326_v12 = vpop.f32.mrb[0].mxu1 }
 0x1a7   :  { %v1330_v19 = vmul.f32 0.03125, %v684_v11  ;;  %v1785_v29 = vpop.f32.mrb[1].mxu0  ;;  %v1995_v36 = vpop.f32.mrb[1].mxu1  ;;  %v1331_v52 = vmul.f32 0.03125, %v1326_v12 }
 0x1a9   :  { %v1332_v46 = vmul.f32 %v1330_v19, %v1330_v19  ;;  %v1335_v53 = vmul.f32 %v1334_v13, %v1330_v19 }
 0x1ab   :  { %v1333_v54 = vsub.f32 %v1331_v52, %v1332_v46  ;;  %1337 = vrot.lane.b32.xlu0 %v1335_v53, %s2355_s21 }
 0x1ad   :  { %v1341_v3 = vadd.f32 1e-05, %v1333_v54 }
 0x1af   :  { %2311 = vrsqrt.f32 %v1341_v3 }
 0x1b9   :  { %v2312_v55 = vpop.eup %2311 }
 0x1ba   :  { %1344 = vrot.lane.b32.xlu0 %v2312_v55, %s2355_s21 }
 0x21d   :  { %v1338_v24 = vpop.permute.xlu0 %1337 }
 0x21e   :  { %v1340_v41 = vsub.f32 %v684_v11, %v1338_v24 }
 0x22c   :  { %v1345_v2 = vpop.permute.xlu0 %1344 }
 0x22d   :  { %v1347_v5 = vmul.f32 %v1345_v2, %v1340_v41 }
 0x22f   :  { %v1349_v6 = vadd.f32 %v1348_v4, %v1347_v5 }
 0x231   :  { %1351 = vrot.lane.b32.xlu1 %v1349_v6, %s2356_s23 }
 0x2a3   :  { %v1352_v7 = vpop.permute.xlu1 %1351 }
 0x2a4   :  { %1355 = vst.msk [vmem:[#allocation5] sm:$0xf] %vm1354_vm1, %v1352_v7 }
 0x2a5   :  { %2336 = shalt.err (!%p2333_p9)
}
 0x2a6   :  { %s2337_s29 = scalar_lea.hbm %s2804_s3, 64 }
 0x2a7   :  { %p2338_p10 = scmp.ne.s32.totalorder %s2804_s3, %s2337_s29  ;;  %p2341_p11 = scmp.lt.u32.totalorder %s2337_s29, %s2804_s3 }
 0x2a9   :  { %p2343_p12 = pnand %p2341_p11, %p2338_p10 }
 0x2ab   :  { %2346 = shalt.err (!%p2343_p12)
}
 0x2ac   :  { %1365 = dma.vmem_to_hbm [thread:$0]  %s1363_s25, 64, %s2804_s3, [#allocation3]  }
 0x2ad   :  { %2349 = dma.done.wait [#allocation3], 64  }
 0x2ae   :  { %2350 = vsyncadd [#allocation3], 4294967232 }
 0x2af   :  { %1369 = vsyncpa [#allocation3], 1 }
 0x2b0   :  { %1370 = vsyncpa [#allocation4], 1 }

</bundles_post_ra>
